<compile_context>
chip_gen: v7x
topology: tpu7x:2x2x1
jax: 0.10.0
libtpu: 0.0.40
codegen_flags: <defaults>
</compile_context>

<pallas_src>
import functools

import jax
import jax.numpy as jnp
from jax.experimental import pallas as pl
from jax.experimental.pallas import tpu as pltpu

LANE = 128


# ----------------------------- Pallas kernel --------------------------------

def _conv_bn_lrelu_kernel(w_ref, patches_ref, scale_ref, shift_ref, o_ref):
    """Fused im2col matmul + folded BatchNorm + LeakyReLU(0.01).

    w_ref:       (Cout, KP)   bf16   KP = pad(KH*KW*Cin, 128)   (resident)
    patches_ref: (KP, TM)     bf16   TM pixels of this grid step (streamed)
    scale_ref:   (Cout, 1)    f32    gamma / sqrt(running_var + eps)
    shift_ref:   (Cout, 1)    f32    beta - running_mean * scale
    o_ref:       (Cout, TM)   f32    lane-dense (TM multiple of 128)
    """
    acc = jnp.dot(w_ref[...], patches_ref[...],
                  preferred_element_type=jnp.float32)            # MXU, f32 acc
    y = acc * scale_ref[...] + shift_ref[...]                    # folded BN (VPU)
    o_ref[...] = jnp.where(y > 0, y, jnp.float32(0.01) * y)      # LeakyReLU(0.01)


def _fused_conv_bn_lrelu(w_mat, patches_t, scale, shift, *, tile_m):
    Cout, KP = w_mat.shape
    KP2, Mp = patches_t.shape
    assert KP == KP2 and Mp % tile_m == 0

    bytes_accessed = (patches_t.size * 2 + w_mat.size * 2
                      + scale.size * 4 + shift.size * 4 + Cout * Mp * 4)
    cost = pl.CostEstimate(flops=2 * Cout * KP * Mp,
                           transcendentals=0,
                           bytes_accessed=bytes_accessed)

    # Double-buffered patch/output tiles + resident weight/scale/shift, plus headroom.
    tile_bytes = (2 * (KP * tile_m * 2 + Cout * tile_m * 4)
                  + Cout * KP * 2 + 2 * Cout * 4)
    vmem_limit = int(min(max(8 * tile_bytes, 16 * 1024 * 1024), 48 * 1024 * 1024))

    return pl.pallas_call(
        _conv_bn_lrelu_kernel,
        out_shape=jax.ShapeDtypeStruct((Cout, Mp), jnp.float32),
        grid_spec=pltpu.PrefetchScalarGridSpec(
            num_scalar_prefetch=0,
            grid=(Mp // tile_m,),
            in_specs=[
                pl.BlockSpec((Cout, KP), lambda i: (0, 0)),     # weight (resident)
                pl.BlockSpec((KP, tile_m), lambda i: (0, i)),   # patches (streamed)
                pl.BlockSpec((Cout, 1), lambda i: (0, 0)),      # BN scale (resident)
                pl.BlockSpec((Cout, 1), lambda i: (0, 0)),      # BN shift (resident)
            ],
            out_specs=pl.BlockSpec((Cout, tile_m), lambda i: (0, i)),
        ),
        compiler_params=pltpu.CompilerParams(
            dimension_semantics=("parallel",),
            vmem_limit_bytes=vmem_limit),
        cost_estimate=cost,
    )(w_mat, patches_t, scale, shift)


# ------------------------------ JAX glue -------------------------------------

def _same_pad_amounts(size, kernel, stride):
    """TF-style 'same' padding (what Conv2dSame implements)."""
    out = -(-size // stride)  # ceil
    pad_total = max((out - 1) * stride + kernel - size, 0)
    return pad_total // 2, pad_total - pad_total // 2, out


def _round_up(x, m):
    return -(-x // m) * m


@functools.partial(jax.jit, static_argnames=("kernel", "stride", "tile_m"))
def custom_init_layers_forward(x_nchw, w_oihw, gamma, beta, running_mean,
                               running_var, *, kernel=5, stride=2, eps=1e-5,
                               tile_m=1024):
    """Conv2dSame(bias=False) -> BatchNorm2d (running stats) -> LeakyReLU(0.01).

    x_nchw : (N, Cin, H, W) float32
    w_oihw : (Cout, Cin, KH, KW) float32 (PyTorch conv weight layout)
    returns: (N, Cout, OH, OW) float32
    """
    N, Cin, H, W = x_nchw.shape
    Cout = w_oihw.shape[0]

    ph0, ph1, OH = _same_pad_amounts(H, kernel, stride)
    pw0, pw1, OW = _same_pad_amounts(W, kernel, stride)
    x_pad = jnp.pad(x_nchw, ((0, 0), (0, 0), (ph0, ph1), (pw0, pw1)))

    M = N * OH * OW
    Kdim = kernel * kernel * Cin
    KP = _round_up(Kdim, LANE)                 # contraction dim 75 -> 128
    tile = min(tile_m, _round_up(M, LANE))     # pixel tile (multiple of 128)
    Mp = _round_up(M, tile)                    # pixel dim padded to tile multiple

    # Transposed im2col in bf16: rows ordered (kh, kw, cin), columns (n, oh, ow).
    x_bf16 = x_pad.astype(jnp.bfloat16)
    cols = []
    for kh in range(kernel):
        for kw in range(kernel):
            s = x_bf16[:, :, kh:kh + stride * OH:stride,
                       kw:kw + stride * OW:stride]           # (N, Cin, OH, OW)
            cols.append(jnp.moveaxis(s, 1, 0).reshape(Cin, M))
    patches_t = jnp.concatenate(cols, axis=0)                # (Kdim, M)
    patches_t = jnp.pad(patches_t, ((0, KP - Kdim), (0, Mp - M)))

    # weight (Cout, Cin, KH, KW) -> (Cout, KH, KW, Cin) -> (Cout, Kdim) -> pad -> bf16.
    w_mat = jnp.transpose(w_oihw, (0, 2, 3, 1)).reshape(Cout, Kdim)
    w_mat = jnp.pad(w_mat, ((0, 0), (0, KP - Kdim))).astype(jnp.bfloat16)

    # Fold BN (eval mode) into per-channel scale/shift, kept in f32.
    scale = (gamma / jnp.sqrt(running_var + eps)).astype(jnp.float32)
    shift = (beta - running_mean * scale).astype(jnp.float32)

    out_t = _fused_conv_bn_lrelu(w_mat, patches_t,
                                 scale.reshape(Cout, 1), shift.reshape(Cout, 1),
                                 tile_m=tile)                # (Cout, Mp)

    out = out_t[:, :M].reshape(Cout, N, OH, OW)
    return jnp.transpose(out, (1, 0, 2, 3))                  # back to NCHW


# Pure-JAX f32 reference for the correctness check.
def _reference(x_nchw, w_oihw, gamma, beta, mean, var, *, kernel=5, stride=2,
               eps=1e-5):
    _, _, H, W = x_nchw.shape
    ph0, ph1, _ = _same_pad_amounts(H, kernel, stride)
    pw0, pw1, _ = _same_pad_amounts(W, kernel, stride)
    y = jax.lax.conv_general_dilated(
        x_nchw, w_oihw, window_strides=(stride, stride),
        padding=((ph0, ph1), (pw0, pw1)),
        dimension_numbers=("NCHW", "OIHW", "NCHW"))
    s = (gamma / jnp.sqrt(var + eps)).reshape(1, -1, 1, 1)
    b = (beta - mean * gamma / jnp.sqrt(var + eps)).reshape(1, -1, 1, 1)
    y = y * s + b
    return jnp.where(y > 0, y, 0.01 * y)


# ------------------------------- main ----------------------------------------

if __name__ == "__main__":
    key = jax.random.PRNGKey(0)
    k_x, k_w, k_g, k_b, k_m, k_v = jax.random.split(key, 6)

    # Small shapes consistent with the module (input_channels=3, initial_filters=64).
    N, Cin, H, W = 2, 3, 32, 32
    Cout, K = 64, 5

    x = jax.random.normal(k_x, (N, Cin, H, W), dtype=jnp.float32)
    # Deterministic synthetic parameters (not a checkpoint load).
    w = 0.05 * jax.random.normal(k_w, (Cout, Cin, K, K), dtype=jnp.float32)
    gamma = 1.0 + 0.1 * jax.random.normal(k_g, (Cout,), dtype=jnp.float32)
    beta = 0.1 * jax.random.normal(k_b, (Cout,), dtype=jnp.float32)
    running_mean = 0.1 * jax.random.normal(k_m, (Cout,), dtype=jnp.float32)
    running_var = 0.5 + jnp.abs(jax.random.normal(k_v, (Cout,), dtype=jnp.float32))

    # tile_m=256 -> M = 2*16*16 = 512 pixels -> grid of 2 pixel tiles.
    out = custom_init_layers_forward(x, w, gamma, beta, running_mean,
                                     running_var, kernel=K, stride=2,
                                     tile_m=256)
    out = jax.block_until_ready(out)

    ref = _reference(x, w, gamma, beta, running_mean, running_var,
                     kernel=K, stride=2)
    assert out.shape == (N, Cout, H // 2, W // 2), out.shape
    max_err = float(jnp.max(jnp.abs(out - ref)))
    assert jnp.allclose(out, ref, atol=5e-2, rtol=5e-2), max_err  # bf16 operands

    print("KERNEL_OK")
</pallas_src>

<mosaic_0001>
module attributes {stable_mosaic.version = 11 : i64} {
  func.func @_conv_bn_lrelu_kernel(%arg0: i32, %arg1: memref<64x128xbf16, #tpu.memory_space<vmem>>, %arg2: memref<128x256xbf16, #tpu.memory_space<vmem>>, %arg3: memref<64x1xf32, #tpu.memory_space<vmem>>, %arg4: memref<64x1xf32, #tpu.memory_space<vmem>>, %arg5: memref<64x256xf32, #tpu.memory_space<vmem>>) attributes {dimension_semantics = [#tpu.dimension_semantics<parallel>], iteration_bounds = array<i64: 2>, scalar_prefetch = 0 : i64, scratch_operands = 0 : i64, tpu.core_type = #tpu.core_type<tc>, window_params = [{pipeline_mode = #tpu.pipeline_mode<synchronous>, transform_indices = @transform_0, window_bounds = array<i64: 64, 128>}, {transform_indices = @transform_1, window_bounds = array<i64: 128, 256>}, {pipeline_mode = #tpu.pipeline_mode<synchronous>, transform_indices = @transform_2, window_bounds = array<i64: 64, 1>}, {pipeline_mode = #tpu.pipeline_mode<synchronous>, transform_indices = @transform_3, window_bounds = array<i64: 64, 1>}, {transform_indices = @transform_4, window_bounds = array<i64: 64, 256>}]} {
    %c0 = arith.constant 0 : index
    %c0_0 = arith.constant 0 : index
    %0 = vector.load %arg1[%c0, %c0_0] : memref<64x128xbf16, #tpu.memory_space<vmem>>, vector<64x128xbf16>
    %c0_1 = arith.constant 0 : index
    %c0_2 = arith.constant 0 : index
    %1 = vector.load %arg2[%c0_1, %c0_2] : memref<128x256xbf16, #tpu.memory_space<vmem>>, vector<128x256xbf16>
    %cst = arith.constant dense<0.000000e+00> : vector<64x256xf32>
    %2 = tpu.matmul %0, %1, %cst {dimension_numbers = #tpu.dot_dimension_numbers<[1], [0], [0], [1], [0, 0, 1, 1], [], []>} : vector<64x128xbf16>, vector<128x256xbf16>, vector<64x256xf32> -> vector<64x256xf32>
    %c0_3 = arith.constant 0 : index
    %c0_4 = arith.constant 0 : index
    %3 = vector.load %arg3[%c0_3, %c0_4] : memref<64x1xf32, #tpu.memory_space<vmem>>, vector<64x1xf32>
    %4 = vector.broadcast %3 : vector<64x1xf32> to vector<64x256xf32>
    %5 = arith.mulf %2, %4 : vector<64x256xf32>
    %c0_5 = arith.constant 0 : index
    %c0_6 = arith.constant 0 : index
    %6 = vector.load %arg4[%c0_5, %c0_6] : memref<64x1xf32, #tpu.memory_space<vmem>>, vector<64x1xf32>
    %7 = vector.broadcast %6 : vector<64x1xf32> to vector<64x256xf32>
    %8 = arith.addf %5, %7 : vector<64x256xf32>
    %cst_7 = arith.constant 0.000000e+00 : f32
    %9 = vector.broadcast %cst_7 : f32 to vector<64x256xf32>
    %10 = arith.cmpf ogt, %8, %9 : vector<64x256xf32>
    %cst_8 = arith.constant 0.00999999977 : f32
    %11 = vector.broadcast %cst_8 : f32 to vector<64x256xf32>
    %12 = arith.mulf %11, %8 : vector<64x256xf32>
    %13 = arith.select %10, %8, %12 : vector<64x256xi1>, vector<64x256xf32>
    %c0_9 = arith.constant 0 : index
    %c0_10 = arith.constant 0 : index
    %14 = vector.load %arg5[%c0_9, %c0_10] : memref<64x256xf32, #tpu.memory_space<vmem>>, vector<64x256xf32>
    tpu.vector_store %arg5[%c0_9, %c0_10], %13 {strides = array<i32>} : memref<64x256xf32, #tpu.memory_space<vmem>>, vector<64x256xf32>,
    return
  }
  func.func @transform_0(%arg0: i32) -> (i32, i32) {
    %c0_i32 = arith.constant 0 : i32
    %c0_i32_0 = arith.constant 0 : i32
    %c0_i32_1 = arith.constant 0 : i32
    return %c0_i32, %c0_i32_0 : i32, i32
  }
  func.func @transform_1(%arg0: i32) -> (i32, i32) {
    %c0_i32 = arith.constant 0 : i32
    %c0_i32_0 = arith.constant 0 : i32
    return %c0_i32, %arg0 : i32, i32
  }
  func.func @transform_2(%arg0: i32) -> (i32, i32) {
    %c0_i32 = arith.constant 0 : i32
    %c0_i32_0 = arith.constant 0 : i32
    %c0_i32_1 = arith.constant 0 : i32
    return %c0_i32, %c0_i32_0 : i32, i32
  }
  func.func @transform_3(%arg0: i32) -> (i32, i32) {
    %c0_i32 = arith.constant 0 : i32
    %c0_i32_0 = arith.constant 0 : i32
    %c0_i32_1 = arith.constant 0 : i32
    return %c0_i32, %c0_i32_0 : i32, i32
  }
  func.func @transform_4(%arg0: i32) -> (i32, i32) {
    %c0_i32 = arith.constant 0 : i32
    %c0_i32_0 = arith.constant 0 : i32
    return %c0_i32, %arg0 : i32, i32
  }
}

</mosaic_0001>

<bundles_post_ra>
// kernel: custom_init_layers_forward.1
= control target key start
LH: loop header
LB: loop body
LE: loop exit
PB: predicated region body
PF: predicated region fallthrough
CT: control target
= control target key end

     0   :  { %s954_s15 = smov 0   ;;  %s956_s16 = smov 0   ;;  %s1178_s0 = inlined_call_operand.vmem [shape: bf16[64,128], index: 0, kind: input, shape index: {}]   ;;  %s1179_s1 = inlined_call_operand.vmem [shape: bf16[128,512], index: 1, kind: input, shape index: {}]   ;;  %s1180_s2 = inlined_call_operand.vmem [shape: f32[64,1], index: 2, kind: input, shape index: {}]   ;;  %s1181_s3 = inlined_call_operand.vmem [shape: f32[64,1], index: 3, kind: input, shape index: {}]   ;;  %s1182_s4 = inlined_call_operand.vmem [shape: f32[64,512], index: 4, kind: output, shape index: {}]  }
   0x1   :  { %s958_s17 = smov 0  }
   0x2 LB: > { %s796_s18 = sadd.s32 4294967295, %s926_s17   ;;  %s971_s19 = sadd.s32 1, %s926_s17   ;;  %s926_s17 = sphi %s958_s17, %s1186_s17   ;;  %s922_s16 = sphi %s956_s16, %s1185_s16   ;;  %s918_s15 = sphi %s954_s15, %s1184_s15  }
   0x3   : > { %s39_s20 = ssub.s32 %s926_s17, %s971_s19  ;;  %s42_s21 = sadd.s32 1, %s922_s16 }
   0x4   : > { %p40_p0 = scmp.eq.s32.totalorder %s39_s20, 0  ;;  %p49_p1 = scmp.ne.s32.totalorder %s922_s16, %s918_s15 }
   0x5   : > { %p50_p2 = scmp.eq.s32.totalorder %s926_s17, 0  ;;  %p121_p3 = scmp.eq.s32.totalorder %s796_s18, 1 }
   0x6   : > { %s982_s22 = scalar_select %p40_p0, %s922_s16, %s42_s21  }
   0x7   : > { %p51_p4 = por %p50_p2, %p49_p1  ;;  %p984_p5 = por %p121_p3, %p49_p1 }
   0x8   : > { %p799_p6 = scmp.ge.s32.totalorder %s926_s17, 2 }
   0xa   : > { %152 = sbr.rel (%p799_p6) target bundleno = 29 (0x1d), region = 28 }
  0x11   : > { %155 = sbr.rel (!%p51_p4) target bundleno = 29 (0x1d), region = 32  ;;  %s157_s24 = sand.u32 (%p51_p4), 1, %s922_s16  }
  0x12   : > { %s831_s25 = sshll.u32 (%p51_p4), %s926_s17, 3  ;;  %s800_s26 = sshll.u32 (%p51_p4), %s157_s24, 7 }
  0x13   : > { %s994_s29 = scalar_lea.vmem (%p51_p4), %s1179_s1, %s831_s25  ;;  %s159_s30 = scalar_lea.vmem (%p51_p4), [#allocation2], %s800_s26 }
  0x14   : > { %v220_v0 = vld [vmem:[%s994_s29] sm:$0xff] (%p51_p4)  ;;  %v222_v1 = vld [vmem:[%s994_s29 + $0x10] sm:$0xff] (%p51_p4) }
  0x15   : > { %v224_v2 = vld [vmem:[%s994_s29 + $0x20] sm:$0xff] (%p51_p4)  ;;  %221 = vst [vmem:[%s159_s30] sm:$0xff] (%p51_p4), %v220_v0  ;;  %223 = vst [vmem:[%s159_s30 + $0x8] sm:$0xff] (%p51_p4), %v222_v1  ;;  %v226_v3 = vld [vmem:[%s994_s29 + $0x30] sm:$0xff] (%p51_p4) }
  0x16   : > { %225 = vst [vmem:[%s159_s30 + $0x10] sm:$0xff] (%p51_p4), %v224_v2  ;;  %v228_v4 = vld [vmem:[%s994_s29 + $0x40] sm:$0xff] (%p51_p4)  ;;  %v230_v5 = vld [vmem:[%s994_s29 + $0x50] sm:$0xff] (%p51_p4)  ;;  %227 = vst [vmem:[%s159_s30 + $0x18] sm:$0xff] (%p51_p4), %v226_v3 }
  0x17   : > { %229 = vst [vmem:[%s159_s30 + $0x20] sm:$0xff] (%p51_p4), %v228_v4  ;;  %231 = vst [vmem:[%s159_s30 + $0x28] sm:$0xff] (%p51_p4), %v230_v5  ;;  %v232_v6 = vld [vmem:[%s994_s29 + $0x60] sm:$0xff] (%p51_p4)  ;;  %v234_v7 = vld [vmem:[%s994_s29 + $0x70] sm:$0xff] (%p51_p4) }
  0x18   : > { %v236_v8 = vld [vmem:[%s994_s29 + $0x80] sm:$0xff]  ;;  %233 = vst [vmem:[%s159_s30 + $0x30] sm:$0xff] %v232_v6  ;;  %235 = vst [vmem:[%s159_s30 + $0x38] sm:$0xff] %v234_v7  ;;  %v238_v9 = vld [vmem:[%s994_s29 + $0x90] sm:$0xff] }
  0x19   : > { %237 = vst [vmem:[%s159_s30 + $0x40] sm:$0xff] %v236_v8  ;;  %v240_v10 = vld [vmem:[%s994_s29 + $0xa0] sm:$0xff]  ;;  %v242_v11 = vld [vmem:[%s994_s29 + $0xb0] sm:$0xff]  ;;  %239 = vst [vmem:[%s159_s30 + $0x48] sm:$0xff] %v238_v9 }
  0x1a   : > { %241 = vst [vmem:[%s159_s30 + $0x50] sm:$0xff] %v240_v10  ;;  %243 = vst [vmem:[%s159_s30 + $0x58] sm:$0xff] %v242_v11  ;;  %v244_v12 = vld [vmem:[%s994_s29 + $0xc0] sm:$0xff]  ;;  %v246_v13 = vld [vmem:[%s994_s29 + $0xd0] sm:$0xff] }
  0x1b   : > { %v248_v14 = vld [vmem:[%s994_s29 + $0xe0] sm:$0xff]  ;;  %245 = vst [vmem:[%s159_s30 + $0x60] sm:$0xff] %v244_v12  ;;  %247 = vst [vmem:[%s159_s30 + $0x68] sm:$0xff] %v246_v13  ;;  %v250_v15 = vld [vmem:[%s994_s29 + $0xf0] sm:$0xff] }
  0x1c   : > { %249 = vst [vmem:[%s159_s30 + $0x70] sm:$0xff] %v248_v14  ;;  %251 = vst [vmem:[%s159_s30 + $0x78] sm:$0xff] %v250_v15 }
  0x1d PF: > { %p803_p7 = scmp.ge.s32.totalorder %s926_s17, 1  ;;  %p256_p8 = scmp.lt.s32.totalorder %s926_s17, 3 }
  0x1f   : > { %p257_p9 = pnand %p803_p7, %p256_p8 }
  0x20   : > { %s263_s5 = sand.u32 (!%p257_p9), 1, %s918_s15   ;;  %v928_v16 = vmov (!%p257_p9), 0   ;;  %v493_v26 = vld [vmem:[%s1180_s2 + $0x10] sm:$0xff] (!%p257_p9)  ;;  %v491_v27 = vld [vmem:[%s1180_s2] sm:$0xff] (!%p257_p9)  ;;  %v494_v28 = vld [vmem:[%s1180_s2 + $0x18] sm:$0xff] (!%p257_p9) }
  0x21   : > { %260 = sbr.rel (%p257_p9) target bundleno = 313 (0x139), region = 70  ;;  %s1015_s6 = sshll.u32 (!%p257_p9), %s263_s5, 7  ;;  %450 = vmatprep.mubr.bf16.mxu0 (!%p257_p9), %v928_v16  ;;  %470 = vmatprep.mubr.bf16.mxu1 (!%p257_p9), %v928_v16  ;;  %v492_v29 = vld [vmem:[%s1180_s2 + $0x8] sm:$0xff] (!%p257_p9)  ;;  %v495_v33 = vld [vmem:[%s1180_s2 + $0x20] sm:$0xff] (!%p257_p9)  ;;  %v498_v36 = vld [vmem:[%s1180_s2 + $0x38] sm:$0xff] (!%p257_p9) }
  0x22   : > { %875 = vset.pattern.permute.xlu1 (!%p257_p9), %v928_v16  ;;  %874 = vset.pattern.permute.xlu0 (!%p257_p9), %v928_v16  ;;  %s1022_s7 = scalar_lea.vmem (!%p257_p9), [#allocation2], %s1015_s6  ;;  %v496_v32 = vld [vmem:[%s1180_s2 + $0x28] sm:$0xff] (!%p257_p9)  ;;  %v497_v37 = vld [vmem:[%s1180_s2 + $0x30] sm:$0xff] (!%p257_p9)  ;;  %v555_v41 = vld [vmem:[%s1181_s3] sm:$0xff] (!%p257_p9)  ;;  %s1115_s11 = scalar_lea.vmem (!%p257_p9), [#allocation3], %s1015_s6 }
  0x23   : > { %v876_v17 = vld [vmem:[%s1022_s7 + $0x4] ss:$8 sps:$4 sm:$0xff] (!%p257_p9)   ;;  %v878_v18 = vld [vmem:[%s1022_s7] ss:$8 sps:$4 sm:$0xff] (!%p257_p9)   ;;  %v879_v19 = vld [vmem:[%s1022_s7 + $0x14] ss:$8 sps:$4 sm:$0xff] (!%p257_p9)   ;;  %511 = vperm.xlu1 (!%p257_p9), %875, %v493_v26   ;;  %501 = vperm.xlu0 (!%p257_p9), %874, %v491_v27  }
  0x24   : > { %418 = vmatprep.subr.bf16.mxu0 (!%p257_p9), %v876_v17  ;;  %833 = vmatprep.subr.bf16.mxu1 (!%p257_p9), %v876_v17  ;;  %v881_v20 = vld [vmem:[%s1022_s7 + $0x10] ss:$8 sps:$4 sm:$0xff] (!%p257_p9)   ;;  %v882_v21 = vld [vmem:[%s1022_s7 + $0x24] ss:$8 sps:$4 sm:$0xff] (!%p257_p9)   ;;  %v884_v22 = vld [vmem:[%s1022_s7 + $0x20] ss:$8 sps:$4 sm:$0xff] (!%p257_p9)  }
  0x25   : > { %419 = vmatpush1.bf16.msra.mxu0 (!%p257_p9), %v878_v18  ;;  %841 = vmatpush1.bf16.msra.mxu1 (!%p257_p9), %v878_v18  ;;  %v885_v23 = vld [vmem:[%s1022_s7 + $0x34] ss:$8 sps:$4 sm:$0xff] (!%p257_p9)   ;;  %v887_v24 = vld [vmem:[%s1022_s7 + $0x30] ss:$8 sps:$4 sm:$0xff] (!%p257_p9)   ;;  %v888_v25 = vld [vmem:[%s1022_s7 + $0x44] ss:$8 sps:$4 sm:$0xff] (!%p257_p9)  }
  0x26   : > { %420 = vmatprep.subr.bf16.mxu0 (!%p257_p9), %v879_v19  ;;  %834 = vmatprep.subr.bf16.mxu1 (!%p257_p9), %v879_v19  ;;  %v890_v30 = vld [vmem:[%s1022_s7 + $0x40] ss:$8 sps:$4 sm:$0xff] (!%p257_p9)   ;;  %v891_v31 = vld [vmem:[%s1022_s7 + $0x54] ss:$8 sps:$4 sm:$0xff] (!%p257_p9)   ;;  %v893_v34 = vld [vmem:[%s1022_s7 + $0x50] ss:$8 sps:$4 sm:$0xff] (!%p257_p9)  }
  0x27   : > { %516 = vperm.xlu1 (!%p257_p9), %875, %v494_v28   ;;  %506 = vperm.xlu0 (!%p257_p9), %874, %v492_v29   ;;  %v894_v35 = vld [vmem:[%s1022_s7 + $0x64] ss:$8 sps:$4 sm:$0xff] (!%p257_p9)   ;;  %v896_v38 = vld [vmem:[%s1022_s7 + $0x60] ss:$8 sps:$4 sm:$0xff] (!%p257_p9)   ;;  %v897_v39 = vld [vmem:[%s1022_s7 + $0x74] ss:$8 sps:$4 sm:$0xff] (!%p257_p9)  }
  0x28   : > { %v556_v40 = vld [vmem:[%s1181_s3 + $0x8] sm:$0xff]  ;;  %v899_v42 = vld [vmem:[%s1022_s7 + $0x70] ss:$8 sps:$4 sm:$0xff]   ;;  %v900_v43 = vld [vmem:[%s1178_s0] sm:$0xff]   ;;  %s832_s6 = sshll.u32 (%p984_p5), %s796_s18, 4 }
  0x29   : > { %421 = vmatpush1.bf16.msra.mxu0 %v881_v20  ;;  %842 = vmatpush1.bf16.msra.mxu1 %v881_v20  ;;  %v901_v44 = vld [vmem:[%s1178_s0 + $0x10] sm:$0xff]   ;;  %v558_v45 = vld [vmem:[%s1181_s3 + $0x18] sm:$0xff]  ;;  %v560_v47 = vld [vmem:[%s1181_s3 + $0x28] sm:$0xff]  ;;  %s692_s23 = scalar_lea.vmem (%p984_p5), %s1182_s4, %s832_s6 }
  0x2a   : > { %422 = vmatprep.subr.bf16.mxu0 %v882_v21  ;;  %835 = vmatprep.subr.bf16.mxu1 %v882_v21  ;;  %v557_v46 = vld [vmem:[%s1181_s3 + $0x10] sm:$0xff]  ;;  %v559_v48 = vld [vmem:[%s1181_s3 + $0x20] sm:$0xff]  ;;  %v902_v49 = vld [vmem:[%s1178_s0 + $0x8] sm:$0xff]  }
  0x2b   : > { %526 = vperm.xlu1 %875, %v496_v32   ;;  %521 = vperm.xlu0 %874, %v495_v33   ;;  %v903_v50 = vld [vmem:[%s1178_s0 + $0x18] sm:$0xff]   ;;  %v561_v52 = vld [vmem:[%s1181_s3 + $0x30] sm:$0xff] }
  0x2c   : > { %v562_v51 = vld [vmem:[%s1181_s3 + $0x38] sm:$0xff] }
  0x2d   : > { %423 = vmatpush1.bf16.msra.mxu0 %v884_v22  ;;  %843 = vmatpush1.bf16.msra.mxu1 %v884_v22 }
  0x2e   : > { %424 = vmatprep.subr.bf16.mxu0 %v885_v23  ;;  %836 = vmatprep.subr.bf16.mxu1 %v885_v23 }
  0x2f   : > { %536 = vperm.xlu1 %875, %v498_v36   ;;  %531 = vperm.xlu0 %874, %v497_v37  }
  0x31   : > { %425 = vmatpush1.bf16.msra.mxu0 %v887_v24  ;;  %844 = vmatpush1.bf16.msra.mxu1 %v887_v24 }
  0x32   : > { %426 = vmatprep.subr.bf16.mxu0 %v888_v25  ;;  %837 = vmatprep.subr.bf16.mxu1 %v888_v25 }
  0x33   : > { %570 = vperm.xlu1 %875, %v556_v40   ;;  %565 = vperm.xlu0 %874, %v555_v41  }
  0x35   : > { %427 = vmatpush1.bf16.msra.mxu0 %v890_v30  ;;  %845 = vmatpush1.bf16.msra.mxu1 %v890_v30 }
  0x36   : > { %428 = vmatprep.subr.bf16.mxu0 %v891_v31  ;;  %838 = vmatprep.subr.bf16.mxu1 %v891_v31 }
  0x37   : > { %580 = vperm.xlu1 %875, %v558_v45   ;;  %575 = vperm.xlu0 %874, %v557_v46  }
  0x39   : > { %429 = vmatpush1.bf16.msra.mxu0 %v893_v34  ;;  %846 = vmatpush1.bf16.msra.mxu1 %v893_v34 }
  0x3a   : > { %430 = vmatprep.subr.bf16.mxu0 %v894_v35  ;;  %839 = vmatprep.subr.bf16.mxu1 %v894_v35 }
  0x3b   : > { %590 = vperm.xlu1 %875, %v560_v47   ;;  %585 = vperm.xlu0 %874, %v559_v48  }
  0x3d   : > { %431 = vmatpush1.bf16.msra.mxu0 %v896_v38  ;;  %847 = vmatpush1.bf16.msra.mxu1 %v896_v38 }
  0x3e   : > { %432 = vmatprep.subr.bf16.mxu0 %v897_v39  ;;  %840 = vmatprep.subr.bf16.mxu1 %v897_v39 }
  0x3f   : > { %600 = vperm.xlu1 %875, %v562_v51   ;;  %595 = vperm.xlu0 %874, %v561_v52  }
  0x41   : > { %433 = vmatpush1.bf16.msra.mxu0 %v899_v42  ;;  %848 = vmatpush1.bf16.msra.mxu1 %v899_v42 }
  0x44   : > { %451 = vmatmul.mubr.bf16.vlgmr.msra.gmra.mrb[0].mxu0 %v900_v43  ;;  %471 = vmatmul.mubr.bf16.vlgmr.msra.gmra.mrb[0].mxu1 %v901_v44 }
  0x45   : > { %460 = vmatprep.mubr.bf16.mxu0 %v928_v16  ;;  %480 = vmatprep.mubr.bf16.mxu1 %v928_v16 }
  0x4c   : > { %461 = vmatmul.mubr.bf16.gmra.mrb[4].mxu0 %v902_v49  ;;  %481 = vmatmul.mubr.bf16.gmra.mrb[4].mxu1 %v903_v50 }
  0xa2   : > { %v502_v53 = vpop.permute.xlu0 %501  ;;  %v1102_v54 = vpop.permute.xlu1 %511 }
  0xa6   : > { %v507_v55 = vpop.permute.xlu0 %506  ;;  %v1104_v56 = vpop.permute.xlu1 %516 }
  0xaa   : > { %v522_v57 = vpop.permute.xlu0 %521  ;;  %v527_v58 = vpop.permute.xlu1 %526 }
  0xae   : > { %v1106_v59 = vpop.permute.xlu0 %531  ;;  %v1108_v60 = vpop.permute.xlu1 %536 }
  0xb2   : > { %v566_v61 = vpop.permute.xlu0 %565  ;;  %v571_v62 = vpop.permute.xlu1 %570 }
  0xb6   : > { %v1110_v63 = vpop.permute.xlu0 %575  ;;  %v1112_v0 = vpop.permute.xlu1 %580 }
  0xba   : > { %v586_v1 = vpop.permute.xlu0 %585  ;;  %v591_v24 = vpop.permute.xlu1 %590 }
  0xbe   : > { %v596_v39 = vpop.permute.xlu0 %595 }
 0x117   : > { %v452_v2 = vpop.f32.mrb[0].mxu0  ;;  %v472_v3 = vpop.f32.mrb[0].mxu1 }
 0x118   : > { %v539_v4 = vmul.f32 %v502_v53, %v452_v2  ;;  %v547_v5 = vmul.f32 %v522_v57, %v472_v3  ;;  %v454_v6 = vpop.f32.mrb[1].mxu0  ;;  %v474_v7 = vpop.f32.mrb[1].mxu1 }
 0x119   : > { %v540_v8 = vmul.f32 %v502_v53, %v454_v6  ;;  %v548_v9 = vmul.f32 %v522_v57, %v474_v7  ;;  %v456_v10 = vpop.f32.mrb[2].mxu0  ;;  %v476_v11 = vpop.f32.mrb[2].mxu1 }
 0x11a   : > { %v603_v12 = vadd.f32 %v566_v61, %v539_v4  ;;  %v611_v13 = vadd.f32 %v586_v1, %v547_v5  ;;  %v541_v14 = vmul.f32 %v507_v55, %v456_v10  ;;  %v549_v15 = vmul.f32 %v527_v58, %v476_v11  ;;  %v458_v16 = vpop.f32.mrb[3].mxu0  ;;  %v478_v17 = vpop.f32.mrb[3].mxu1 }
 0x11b   : > { %v604_v18 = vadd.f32 %v566_v61, %v540_v8  ;;  %v612_v19 = vadd.f32 %v586_v1, %v548_v9  ;;  %v542_v20 = vmul.f32 %v507_v55, %v458_v16  ;;  %v550_v21 = vmul.f32 %v527_v58, %v478_v17  ;;  %v601_v6 = vpop.permute.xlu1 %600 }
 0x11c   : > { %vm619_vm0 = vcmp.gt.f32.partialorder %v603_v12, 0.0  ;;  %v635_v22 = vmul.f32 0.01, %v603_v12  ;;  %vm627_vm1 = vcmp.gt.f32.partialorder %v611_v13, 0.0  ;;  %v643_v23 = vmul.f32 0.01, %v611_v13 }
 0x11d   : > { %vm620_vm2 = vcmp.gt.f32.partialorder %v604_v18, 0.0  ;;  %v636_v25 = vmul.f32 0.01, %v604_v18  ;;  %vm628_vm3 = vcmp.gt.f32.partialorder %v612_v19, 0.0  ;;  %v644_v26 = vmul.f32 0.01, %v612_v19 }
 0x11e   : > { %v651_v27 = vsel %vm619_vm0, %v603_v12, %v635_v22  ;;  %v659_v28 = vsel %vm627_vm1, %v611_v13, %v643_v23  ;;  %v605_v29 = vadd.f32 %v571_v62, %v541_v14  ;;  %v613_v30 = vadd.f32 %v591_v24, %v549_v15 }
 0x11f   : > { %667 = vst [vmem:[%s1115_s11] sm:$0xff] %v651_v27  ;;  %675 = vst [vmem:[%s1115_s11 + $0x40] sm:$0xff] %v659_v28  ;;  %v652_v31 = vsel %vm620_vm2, %v604_v18, %v636_v25  ;;  %v660_v32 = vsel %vm628_vm3, %v612_v19, %v644_v26  ;;  %v606_v33 = vadd.f32 %v571_v62, %v542_v20  ;;  %v462_v35 = vpop.f32.mrb[4].mxu0  ;;  %v482_v36 = vpop.f32.mrb[4].mxu1 }
 0x120   : > { %v614_v34 = vadd.f32 %v591_v24, %v550_v21  ;;  %668 = vst [vmem:[%s1115_s11 + $0x8] sm:$0xff] %v652_v31  ;;  %676 = vst [vmem:[%s1115_s11 + $0x48] sm:$0xff] %v660_v32  ;;  %vm621_vm4 = vcmp.gt.f32.partialorder %v605_v29, 0.0  ;;  %v637_v37 = vmul.f32 0.01, %v605_v29  ;;  %vm629_vm5 = vcmp.gt.f32.partialorder %v613_v30, 0.0 }
 0x121   : > { %v645_v38 = vmul.f32 0.01, %v613_v30  ;;  %vm622_vm6 = vcmp.gt.f32.partialorder %v606_v33, 0.0  ;;  %v638_v40 = vmul.f32 0.01, %v606_v33  ;;  %v543_v44 = vmul.f32 %v1102_v54, %v462_v35  ;;  %v464_v46 = vpop.f32.mrb[5].mxu0 }
 0x122   : > { %vm630_vm7 = vcmp.gt.f32.partialorder %v614_v34, 0.0  ;;  %v646_v41 = vmul.f32 0.01, %v614_v34  ;;  %v653_v42 = vsel %vm621_vm4, %v605_v29, %v637_v37  ;;  %v551_v45 = vmul.f32 %v1106_v59, %v482_v36  ;;  %v484_v47 = vpop.f32.mrb[5].mxu1  ;;  %v466_v52 = vpop.f32.mrb[6].mxu0 }
 0x123   : > { %v661_v43 = vsel %vm629_vm5, %v613_v30, %v645_v38  ;;  %669 = vst [vmem:[%s1115_s11 + $0x10] sm:$0xff] %v653_v42  ;;  %v654_v48 = vsel %vm622_vm6, %v606_v33, %v638_v40  ;;  %v544_v50 = vmul.f32 %v1102_v54, %v464_v46  ;;  %v552_v51 = vmul.f32 %v1106_v59, %v484_v47  ;;  %v486_v53 = vpop.f32.mrb[6].mxu1  ;;  %v468_v62 = vpop.f32.mrb[7].mxu0 }
 0x124   : > { %677 = vst [vmem:[%s1115_s11 + $0x50] sm:$0xff] %v661_v43  ;;  %v662_v49 = vsel %vm630_vm7, %v614_v34, %v646_v41  ;;  %670 = vst [vmem:[%s1115_s11 + $0x18] sm:$0xff] %v654_v48  ;;  %v607_v55 = vadd.f32 %v1110_v63, %v543_v44  ;;  %v615_v57 = vadd.f32 %v596_v39, %v551_v45  ;;  %v488_v1 = vpop.f32.mrb[7].mxu1 }
 0x125   : > { %678 = vst [vmem:[%s1115_s11 + $0x58] sm:$0xff] %v662_v49  ;;  %v545_v58 = vmul.f32 %v1104_v56, %v466_v52  ;;  %v553_v61 = vmul.f32 %v1108_v60, %v486_v53  ;;  %v608_v2 = vadd.f32 %v1110_v63, %v544_v50  ;;  %v616_v3 = vadd.f32 %v596_v39, %v552_v51 }
 0x126   : > { %v546_v54 = vmul.f32 %v1104_v56, %v468_v62  ;;  %v554_v59 = vmul.f32 %v1108_v60, %v488_v1  ;;  %vm623_vm8 = vcmp.gt.f32.partialorder %v607_v55, 0.0  ;;  %v639_v4 = vmul.f32 0.01, %v607_v55  ;;  %v721_v29 = vld [vmem:[%s1115_s11 + $0x40] sm:$0xff] (%p984_p5) }
 0x127   : > { %vm631_vm9 = vcmp.gt.f32.partialorder %v615_v57, 0.0  ;;  %v647_v5 = vmul.f32 0.01, %v615_v57  ;;  %vm624_vm10 = vcmp.gt.f32.partialorder %v608_v2, 0.0  ;;  %v640_v7 = vmul.f32 0.01, %v608_v2 }
 0x128   : > { %vm632_vm11 = vcmp.gt.f32.partialorder %v616_v3, 0.0  ;;  %v648_v8 = vmul.f32 0.01, %v616_v3  ;;  %v655_v9 = vsel %vm623_vm8, %v607_v55, %v639_v4  ;;  %v609_v10 = vadd.f32 %v1112_v0, %v545_v58  ;;  %v707_v22 = vld [vmem:[%s1115_s11 + $0x8] sm:$0xff] (%p984_p5)  ;;  %722 = vst [vmem:[%s692_s23 + $0x80] sm:$0xff] (%p984_p5), %v721_v29 }
 0x129   : > { %v663_v63 = vsel %vm631_vm9, %v615_v57, %v647_v5  ;;  %v617_v11 = vadd.f32 %v601_v6, %v553_v61  ;;  %671 = vst [vmem:[%s1115_s11 + $0x20] sm:$0xff] %v655_v9  ;;  %v656_v56 = vsel %vm624_vm10, %v608_v2, %v640_v7  ;;  %v610_v12 = vadd.f32 %v1112_v0, %v546_v54  ;;  %689 = sbr.rel (!%p984_p5) target bundleno = 313 (0x139), region = 78  ;;  %v705_v0 = vld [vmem:[%s1115_s11] sm:$0xff] (%p984_p5)  ;;  %v723_v30 = vld [vmem:[%s1115_s11 + $0x48] sm:$0xff] (%p984_p5) }
 0x12a   : > { %679 = vst [vmem:[%s1115_s11 + $0x60] sm:$0xff] %v663_v63  ;;  %v664_v60 = vsel %vm632_vm11, %v616_v3, %v648_v8  ;;  %v618_v13 = vadd.f32 %v601_v6, %v554_v59  ;;  %672 = vst [vmem:[%s1115_s11 + $0x28] sm:$0xff] %v656_v56  ;;  %vm625_vm12 = vcmp.gt.f32.partialorder %v609_v10, 0.0  ;;  %v641_v14 = vmul.f32 0.01, %v609_v10  ;;  %v709_v23 = vld [vmem:[%s1115_s11 + $0x10] sm:$0xff] (%p984_p5) }
 0x12b   : > { %680 = vst [vmem:[%s1115_s11 + $0x68] sm:$0xff] %v664_v60  ;;  %vm633_vm13 = vcmp.gt.f32.partialorder %v617_v11, 0.0  ;;  %v649_v15 = vmul.f32 0.01, %v617_v11  ;;  %vm626_vm14 = vcmp.gt.f32.partialorder %v610_v12, 0.0  ;;  %v711_v24 = vld [vmem:[%s1115_s11 + $0x18] sm:$0xff] (%p984_p5)  ;;  %706 = vst [vmem:[%s692_s23] sm:$0xff] (%p984_p5), %v705_v0 }
 0x12c   : > { %v642_v16 = vmul.f32 0.01, %v610_v12  ;;  %vm634_vm15 = vcmp.gt.f32.partialorder %v618_v13, 0.0  ;;  %v650_v17 = vmul.f32 0.01, %v618_v13  ;;  %v657_v18 = vsel %vm625_vm12, %v609_v10, %v641_v14  ;;  %708 = vst [vmem:[%s692_s23 + $0x8] sm:$0xff] (%p984_p5), %v707_v22 }
 0x12d   : > { %v665_v19 = vsel %vm633_vm13, %v617_v11, %v649_v15  ;;  %673 = vst [vmem:[%s1115_s11 + $0x30] sm:$0xff] %v657_v18  ;;  %710 = vst [vmem:[%s692_s23 + $0x20] sm:$0xff] (%p984_p5), %v709_v23  ;;  %v725_v31 = vld [vmem:[%s1115_s11 + $0x50] sm:$0xff] (%p984_p5)  ;;  %v727_v32 = vld [vmem:[%s1115_s11 + $0x58] sm:$0xff] (%p984_p5) }
 0x12e   : > { %681 = vst [vmem:[%s1115_s11 + $0x70] sm:$0xff] %v665_v19  ;;  %v658_v20 = vsel %vm626_vm14, %v610_v12, %v642_v16  ;;  %v666_v21 = vsel %vm634_vm15, %v618_v13, %v650_v17  ;;  %712 = vst [vmem:[%s692_s23 + $0x28] sm:$0xff] (%p984_p5), %v711_v24 }
 0x12f   : > { %674 = vst [vmem:[%s1115_s11 + $0x38] sm:$0xff] %v658_v20  ;;  %682 = vst [vmem:[%s1115_s11 + $0x78] sm:$0xff] %v666_v21 }
 0x130   : > { %v713_v25 = vld [vmem:[%s1115_s11 + $0x20] sm:$0xff]  ;;  %724 = vst [vmem:[%s692_s23 + $0x88] sm:$0xff] %v723_v30  ;;  %726 = vst [vmem:[%s692_s23 + $0xa0] sm:$0xff] %v725_v31 }
 0x131   : > { %v715_v26 = vld [vmem:[%s1115_s11 + $0x28] sm:$0xff]  ;;  %714 = vst [vmem:[%s692_s23 + $0x40] sm:$0xff] %v713_v25  ;;  %728 = vst [vmem:[%s692_s23 + $0xa8] sm:$0xff] %v727_v32  ;;  %v729_v33 = vld [vmem:[%s1115_s11 + $0x60] sm:$0xff] }
 0x132   : > { %716 = vst [vmem:[%s692_s23 + $0x48] sm:$0xff] %v715_v26  ;;  %v731_v34 = vld [vmem:[%s1115_s11 + $0x68] sm:$0xff]  ;;  %730 = vst [vmem:[%s692_s23 + $0xc0] sm:$0xff] %v729_v33 }
 0x133   : > { %732 = vst [vmem:[%s692_s23 + $0xc8] sm:$0xff] %v731_v34 }
 0x134   : > { %v717_v27 = vld [vmem:[%s1115_s11 + $0x30] sm:$0xff] }
 0x135   : > { %718 = vst [vmem:[%s692_s23 + $0x60] sm:$0xff] %v717_v27  ;;  %v733_v35 = vld [vmem:[%s1115_s11 + $0x70] sm:$0xff] }
 0x136   : > { %v719_v28 = vld [vmem:[%s1115_s11 + $0x38] sm:$0xff]  ;;  %734 = vst [vmem:[%s692_s23 + $0xe0] sm:$0xff] %v733_v35 }
 0x137   : > { %720 = vst [vmem:[%s692_s23 + $0x68] sm:$0xff] %v719_v28  ;;  %v735_v36 = vld [vmem:[%s1115_s11 + $0x78] sm:$0xff] }
 0x138   : > { %736 = vst [vmem:[%s692_s23 + $0xe8] sm:$0xff] %v735_v36 }
 0x139 PF: > { %p11_p10 = scmp.ge.s32.totalorder %s971_s19, 4   ;;  %s1184_s15 = smov %s922_s16 }
 0x13a   : > { %s1185_s16 = smov %s982_s22  ;;  %s1186_s17 = smov %s971_s19 }
 0x13b   :  { %13 = sbr.rel (!%p11_p10) target bundleno = 2 (0x2), region = 132 }

</bundles_post_ra>
